<compile_context>
chip_gen: v6e
topology: v6e:2x2x1
jax: 0.10.0
libtpu: 0.0.40
codegen_flags: <defaults>
</compile_context>

<pallas_src>
import jax
import jax.numpy as jnp
from jax.experimental import pallas as pl
from jax.experimental.pallas import tpu as pltpu


_NEG_INF = -1e30  # masks padded vocab columns (exp underflows to 0, no NaNs)


def _round_up(x, m):
    return ((x + m - 1) // m) * m


def _xavier_uniform(key, shape, dtype=jnp.float32):
    # matches torch.nn.init.xavier_uniform_ for a 2-D tensor [fan_out, fan_in]
    fan_out, fan_in = shape
    limit = (6.0 / (fan_in + fan_out)) ** 0.5
    return jax.random.uniform(key, shape, dtype=dtype, minval=-limit, maxval=limit)


# ----------------------------------------------------------------------------
# Fused kernel: sweep 0 = online logsumexp over V tiles, sweep 1 = recompute
# logits and emit log_softmax directly.
# ----------------------------------------------------------------------------
def _fused_log_softmax_kernel(x_ref, w_ref, b_ref, out_ref, m_sc, l_sc):
    # x_ref:   (tB, E_pad) bf16  context-mean activations (resident across s, j)
    # w_ref:   (E_pad, tV) bf16  streamed weight tile
    # b_ref:   (1, tV)     f32   bias tile (padded cols = -1e30)
    # out_ref: (tB, tV)    f32   log_softmax output (written only on sweep 1)
    # m_sc:    (tB, 1)     f32   running max, then logsumexp after sweep 0
    # l_sc:    (tB, 1)     f32   running sum-exp
    s = pl.program_id(1)
    j = pl.program_id(2)
    n_v = pl.num_programs(2)

    @pl.when((s == 0) & (j == 0))
    def _():
        m_sc[...] = jnp.full_like(m_sc, -jnp.inf)
        l_sc[...] = jnp.zeros_like(l_sc)

    # MXU matmul with f32 accumulation (computed on both sweeps).
    h = jnp.dot(x_ref[...], w_ref[...],
                preferred_element_type=jnp.float32) + b_ref[...]

    @pl.when(s == 0)
    def _():
        m_prev = m_sc[...]
        m_new = jnp.maximum(m_prev, jnp.max(h, axis=-1, keepdims=True))
        alpha = jnp.exp(m_prev - m_new)                       # rescale old sum
        l_sc[...] = alpha * l_sc[...] + jnp.sum(jnp.exp(h - m_new),
                                                axis=-1, keepdims=True)
        m_sc[...] = m_new

    @pl.when((s == 0) & (j == n_v - 1))
    def _():
        # m_sc now holds the per-row logsumexp for the rest of this B tile.
        m_sc[...] = m_sc[...] + jnp.log(l_sc[...])

    @pl.when(s == 1)
    def _():
        out_ref[...] = h - m_sc[...]


# ----------------------------------------------------------------------------
# Wrapper factory: caches padded bf16 weights / bias, returns a jitted forward.
# ----------------------------------------------------------------------------
def make_word2vec(emb_table, linear_w, linear_b, *,
                  tile_b=512, tile_v=2048, interpret=False):
    """emb_table: [V, E] f32 (nn.Embedding.weight); linear_w: [V, E] (nn.Linear.weight,
    PyTorch layout); linear_b: [V].  Returns forward(context_word[B, C] int32)."""
    V, E = linear_w.shape

    E_pad = _round_up(E, 128)                       # lane-dense contraction dim
    tV = min(tile_v, _round_up(V, 128))             # lane-dense (>=128) output tile
    V_pad = _round_up(V, tV)

    # Cached, hoisted out of the per-call path: transpose + pad + bf16 cast of the
    # largest tensor, and the padded bias.  bf16 halves HBM/VMEM traffic; matmul
    # accumulation and the softmax stay f32.
    w_pad = jnp.zeros((E_pad, V_pad), jnp.bfloat16).at[:E, :V].set(
        jnp.transpose(linear_w).astype(jnp.bfloat16))
    b_pad = jnp.full((1, V_pad), _NEG_INF, jnp.float32).at[:, :V].set(
        linear_b.astype(jnp.float32))
    emb_f32 = emb_table.astype(jnp.float32)

    def forward(context_word):
        B, C = context_word.shape

        # Embedding gather + mean over the context window (XLA fuses this; the
        # kernel only ever sees a (B, E) activation, never a (B, C, E) HBM tensor).
        mean = jnp.mean(jnp.take(emb_f32, context_word, axis=0), axis=1)   # (B, E)

        tB = min(tile_b, _round_up(B, 8))            # sublane-granular batch tile
        B_pad = _round_up(B, tB)
        n_b = B_pad // tB
        # TODO(synk): on v7x, for large B prefer tB = B_pad // 2 so both TensorCores
        # get a "parallel" B tile even when one tile would fit.

        # Keep the double-buffered working set v7x-safe (<= ~28 MiB) by shrinking tV.
        tv = tV

        def blk_bytes(tb, tv_):
            return 2 * (tb * E_pad * 2 + E_pad * tv_ * 2 + tv_ * 4 + tb * tv_ * 4)

        while blk_bytes(tB, tv) > (28 << 20) and tv > 512 and V_pad % (tv // 2) == 0:
            tv //= 2
        n_v = V_pad // tv

        vmem_limit = int(min(max(blk_bytes(tB, tv) + (8 << 20), 32 << 20), 48 << 20))

        x = jnp.zeros((B_pad, E_pad), jnp.bfloat16).at[:B, :E].set(
            mean.astype(jnp.bfloat16))

        cost = pl.CostEstimate(
            flops=2 * 2 * B_pad * E_pad * V_pad,            # two matmul sweeps
            transcendentals=B_pad * V_pad + B_pad,
            bytes_accessed=(x.size * 2                      # activations
                            + 2 * n_b * w_pad.size * 2      # W streamed twice per B tile
                            + 2 * n_b * b_pad.size * 4
                            + B_pad * V_pad * 4),           # single output write
        )

        out_pad = pl.pallas_call(
            _fused_log_softmax_kernel,
            out_shape=jax.ShapeDtypeStruct((B_pad, V_pad), jnp.float32),
            grid_spec=pltpu.PrefetchScalarGridSpec(
                num_scalar_prefetch=0,
                grid=(n_b, 2, n_v),                          # (B tiles, sweep, V tiles)
                in_specs=[
                    pl.BlockSpec((tB, E_pad), lambda i, s, j: (i, 0)),   # resident x
                    pl.BlockSpec((E_pad, tv), lambda i, s, j: (0, j)),   # streamed W
                    pl.BlockSpec((1, tv),     lambda i, s, j: (0, j)),   # bias tile
                ],
                # Sweep 0 parks the output on block (i, 0) (never flushed mid-sweep);
                # sweep 1 writes each (i, j) block exactly once with final values.
                out_specs=pl.BlockSpec((tB, tv), lambda i, s, j: (i, s * j)),
                scratch_shapes=[pltpu.VMEM((tB, 1), jnp.float32),   # running max / lse
                                pltpu.VMEM((tB, 1), jnp.float32)],  # running sum-exp
            ),
            compiler_params=pltpu.CompilerParams(
                dimension_semantics=("parallel", "arbitrary", "arbitrary"),
                vmem_limit_bytes=vmem_limit,
            ),
            cost_estimate=cost,
            interpret=interpret,
        )(x, w_pad, b_pad)

        out = out_pad[:B, :V]
        # PyTorch's trailing .squeeze(): only removes size-1 dims (no-op for B>1, V>1).
        return jnp.squeeze(out)

    return jax.jit(forward)


if __name__ == "__main__":
    key = jax.random.PRNGKey(0)
    k_emb, k_lin, k_bias, k_ctx = jax.random.split(key, 4)

    emb_size = 32      # E
    vocab_size = 128   # V
    batch = 2          # B
    context = 4        # C (context window size)

    # Parameters (xavier_uniform for dim>1 like _reset_parameters; Linear bias default-ish).
    emb_table = _xavier_uniform(k_emb, (vocab_size, emb_size))   # nn.Embedding.weight [V, E]
    linear_w = _xavier_uniform(k_lin, (vocab_size, emb_size))    # nn.Linear.weight   [V, E]
    bound = emb_size ** -0.5
    linear_b = jax.random.uniform(k_bias, (vocab_size,), minval=-bound, maxval=bound)

    # Input: batch of context-word index windows.
    context_word = jax.random.randint(k_ctx, (batch, context), 0, vocab_size,
                                      dtype=jnp.int32)

    fwd = make_word2vec(emb_table, linear_w, linear_b)
    out = fwd(context_word)
    jax.block_until_ready(out)

    # Pure-JAX f32 reference.
    mean_ref = jnp.mean(jnp.take(emb_table, context_word, axis=0), axis=1)
    ref = jax.nn.log_softmax(mean_ref @ linear_w.T + linear_b, axis=-1)

    assert out.shape == (batch, vocab_size)
    row_sums = jnp.sum(jnp.exp(out), axis=-1)
    assert bool(jnp.all(jnp.abs(row_sums - 1.0) < 1e-3))
    assert bool(jnp.max(jnp.abs(out - ref)) < 5e-2)   # loose tol: bf16 weight streaming

    print("KERNEL_OK")
</pallas_src>

<mosaic_0001>
module attributes {stable_mosaic.version = 11 : i64} {
  func.func @_fused_log_softmax_kernel(%arg0: i32, %arg1: i32, %arg2: i32, %arg3: memref<8x128xbf16, #tpu.memory_space<vmem>>, %arg4: memref<128x128xbf16, #tpu.memory_space<vmem>>, %arg5: memref<1x128xf32, #tpu.memory_space<vmem>>, %arg6: memref<8x128xf32, #tpu.memory_space<vmem>>, %arg7: memref<8x1xf32, #tpu.memory_space<vmem>>, %arg8: memref<8x1xf32, #tpu.memory_space<vmem>>) attributes {dimension_semantics = [#tpu.dimension_semantics<parallel>, #tpu.dimension_semantics<arbitrary>, #tpu.dimension_semantics<arbitrary>], iteration_bounds = array<i64: 1, 2, 1>, scalar_prefetch = 0 : i64, scratch_operands = 2 : i64, tpu.core_type = #tpu.core_type<tc>, window_params = [{transform_indices = @transform_0, window_bounds = array<i64: 8, 128>}, {transform_indices = @transform_1, window_bounds = array<i64: 128, 128>}, {transform_indices = @transform_2, window_bounds = array<i64: 1, 128>}, {transform_indices = @transform_3, window_bounds = array<i64: 8, 128>}]} {
    %c0_i32 = arith.constant 0 : i32
    %0 = arith.cmpi eq, %arg1, %c0_i32 : i32
    %c0_i32_0 = arith.constant 0 : i32
    %1 = arith.cmpi eq, %arg2, %c0_i32_0 : i32
    %2 = arith.andi %0, %1 : i1
    %3 = arith.extui %2 : i1 to i32
    %c0_i32_1 = arith.constant 0 : i32
    %4 = arith.cmpi ne, %3, %c0_i32_1 : i32
    scf.if %4 {
      %cst_13 = arith.constant 0xFF800000 : f32
      %22 = vector.broadcast %cst_13 : f32 to vector<8x1xf32>
      %c0_14 = arith.constant 0 : index
      %c0_15 = arith.constant 0 : index
      %23 = vector.load %arg7[%c0_14, %c0_15] : memref<8x1xf32, #tpu.memory_space<vmem>>, vector<8x1xf32>
      tpu.vector_store %arg7[%c0_14, %c0_15], %22 {strides = array<i32>} : memref<8x1xf32, #tpu.memory_space<vmem>>, vector<8x1xf32>,
      %cst_16 = arith.constant 0.000000e+00 : f32
      %24 = vector.broadcast %cst_16 : f32 to vector<8x1xf32>
      %c0_17 = arith.constant 0 : index
      %c0_18 = arith.constant 0 : index
      %25 = vector.load %arg8[%c0_17, %c0_18] : memref<8x1xf32, #tpu.memory_space<vmem>>, vector<8x1xf32>
      tpu.vector_store %arg8[%c0_17, %c0_18], %24 {strides = array<i32>} : memref<8x1xf32, #tpu.memory_space<vmem>>, vector<8x1xf32>,
    } else {
    }
    %c0 = arith.constant 0 : index
    %c0_2 = arith.constant 0 : index
    %5 = vector.load %arg3[%c0, %c0_2] : memref<8x128xbf16, #tpu.memory_space<vmem>>, vector<8x128xbf16>
    %c0_3 = arith.constant 0 : index
    %c0_4 = arith.constant 0 : index
    %6 = vector.load %arg4[%c0_3, %c0_4] : memref<128x128xbf16, #tpu.memory_space<vmem>>, vector<128x128xbf16>
    %cst = arith.constant dense<0.000000e+00> : vector<8x128xf32>
    %7 = tpu.matmul %5, %6, %cst {dimension_numbers = #tpu.dot_dimension_numbers<[1], [0], [0], [1], [0, 0, 1, 1], [], []>} : vector<8x128xbf16>, vector<128x128xbf16>, vector<8x128xf32> -> vector<8x128xf32>
    %c0_5 = arith.constant 0 : index
    %c0_6 = arith.constant 0 : index
    %8 = vector.load %arg5[%c0_5, %c0_6] : memref<1x128xf32, #tpu.memory_space<vmem>>, vector<1x128xf32>
    %9 = vector.broadcast %8 : vector<1x128xf32> to vector<8x128xf32>
    %10 = arith.addf %7, %9 : vector<8x128xf32>
    %c0_i32_7 = arith.constant 0 : i32
    %11 = arith.cmpi eq, %arg1, %c0_i32_7 : i32
    %12 = arith.extui %11 : i1 to i32
    %c0_i32_8 = arith.constant 0 : i32
    %13 = arith.cmpi ne, %12, %c0_i32_8 : i32
    scf.if %13 {
      %c0_13 = arith.constant 0 : index
      %c0_14 = arith.constant 0 : index
      %22 = vector.load %arg7[%c0_13, %c0_14] : memref<8x1xf32, #tpu.memory_space<vmem>>, vector<8x1xf32>
      %cst_15 = arith.constant dense<0xFF800000> : vector<8xf32>
      %23 = vector.multi_reduction <maximumf>, %10, %cst_15 [1] : vector<8x128xf32> to vector<8xf32>
      %24 = vector.shape_cast %23 : vector<8xf32> to vector<8x1xf32>
      %25 = arith.maximumf %22, %24 : vector<8x1xf32>
      %26 = arith.subf %22, %25 : vector<8x1xf32>
      %27 = math.exp %26 : vector<8x1xf32>
      %c0_16 = arith.constant 0 : index
      %c0_17 = arith.constant 0 : index
      %28 = vector.load %arg8[%c0_16, %c0_17] : memref<8x1xf32, #tpu.memory_space<vmem>>, vector<8x1xf32>
      %29 = arith.mulf %27, %28 : vector<8x1xf32>
      %30 = vector.broadcast %25 : vector<8x1xf32> to vector<8x128xf32>
      %31 = arith.subf %10, %30 : vector<8x128xf32>
      %32 = math.exp %31 : vector<8x128xf32>
      %cst_18 = arith.constant dense<0.000000e+00> : vector<8xf32>
      %33 = vector.multi_reduction <add>, %32, %cst_18 [1] : vector<8x128xf32> to vector<8xf32>
      %34 = vector.shape_cast %33 : vector<8xf32> to vector<8x1xf32>
      %35 = arith.addf %29, %34 : vector<8x1xf32>
      %c0_19 = arith.constant 0 : index
      %c0_20 = arith.constant 0 : index
      %36 = vector.load %arg8[%c0_19, %c0_20] : memref<8x1xf32, #tpu.memory_space<vmem>>, vector<8x1xf32>
      tpu.vector_store %arg8[%c0_19, %c0_20], %35 {strides = array<i32>} : memref<8x1xf32, #tpu.memory_space<vmem>>, vector<8x1xf32>,
      %c0_21 = arith.constant 0 : index
      %c0_22 = arith.constant 0 : index
      %37 = vector.load %arg7[%c0_21, %c0_22] : memref<8x1xf32, #tpu.memory_space<vmem>>, vector<8x1xf32>
      tpu.vector_store %arg7[%c0_21, %c0_22], %25 {strides = array<i32>} : memref<8x1xf32, #tpu.memory_space<vmem>>, vector<8x1xf32>,
    } else {
    }
    %c0_i32_9 = arith.constant 0 : i32
    %14 = arith.cmpi eq, %arg1, %c0_i32_9 : i32
    %c0_i32_10 = arith.constant 0 : i32
    %15 = arith.cmpi eq, %arg2, %c0_i32_10 : i32
    %16 = arith.andi %14, %15 : i1
    %17 = arith.extui %16 : i1 to i32
    %c0_i32_11 = arith.constant 0 : i32
    %18 = arith.cmpi ne, %17, %c0_i32_11 : i32
    scf.if %18 {
      %c0_13 = arith.constant 0 : index
      %c0_14 = arith.constant 0 : index
      %22 = vector.load %arg7[%c0_13, %c0_14] : memref<8x1xf32, #tpu.memory_space<vmem>>, vector<8x1xf32>
      %c0_15 = arith.constant 0 : index
      %c0_16 = arith.constant 0 : index
      %23 = vector.load %arg8[%c0_15, %c0_16] : memref<8x1xf32, #tpu.memory_space<vmem>>, vector<8x1xf32>
      %24 = math.log %23 : vector<8x1xf32>
      %25 = arith.addf %22, %24 : vector<8x1xf32>
      %c0_17 = arith.constant 0 : index
      %c0_18 = arith.constant 0 : index
      %26 = vector.load %arg7[%c0_17, %c0_18] : memref<8x1xf32, #tpu.memory_space<vmem>>, vector<8x1xf32>
      tpu.vector_store %arg7[%c0_17, %c0_18], %25 {strides = array<i32>} : memref<8x1xf32, #tpu.memory_space<vmem>>, vector<8x1xf32>,
    } else {
    }
    %c1_i32 = arith.constant 1 : i32
    %19 = arith.cmpi eq, %arg1, %c1_i32 : i32
    %20 = arith.extui %19 : i1 to i32
    %c0_i32_12 = arith.constant 0 : i32
    %21 = arith.cmpi ne, %20, %c0_i32_12 : i32
    scf.if %21 {
      %c0_13 = arith.constant 0 : index
      %c0_14 = arith.constant 0 : index
      %22 = vector.load %arg7[%c0_13, %c0_14] : memref<8x1xf32, #tpu.memory_space<vmem>>, vector<8x1xf32>
      %23 = vector.broadcast %22 : vector<8x1xf32> to vector<8x128xf32>
      %24 = arith.subf %10, %23 : vector<8x128xf32>
      %c0_15 = arith.constant 0 : index
      %c0_16 = arith.constant 0 : index
      %25 = vector.load %arg6[%c0_15, %c0_16] : memref<8x128xf32, #tpu.memory_space<vmem>>, vector<8x128xf32>
      tpu.vector_store %arg6[%c0_15, %c0_16], %24 {strides = array<i32>} : memref<8x128xf32, #tpu.memory_space<vmem>>, vector<8x128xf32>,
    } else {
    }
    return
  }
  func.func @transform_0(%arg0: i32, %arg1: i32, %arg2: i32) -> (i32, i32) {
    %c0_i32 = arith.constant 0 : i32
    %c0_i32_0 = arith.constant 0 : i32
    return %arg0, %c0_i32 : i32, i32
  }
  func.func @transform_1(%arg0: i32, %arg1: i32, %arg2: i32) -> (i32, i32) {
    %c0_i32 = arith.constant 0 : i32
    %c0_i32_0 = arith.constant 0 : i32
    return %c0_i32, %arg2 : i32, i32
  }
  func.func @transform_2(%arg0: i32, %arg1: i32, %arg2: i32) -> (i32, i32) {
    %c0_i32 = arith.constant 0 : i32
    %c0_i32_0 = arith.constant 0 : i32
    return %c0_i32, %arg2 : i32, i32
  }
  func.func @transform_3(%arg0: i32, %arg1: i32, %arg2: i32) -> (i32, i32) {
    %0 = arith.muli %arg1, %arg2 : i32
    %c0_i32 = arith.constant 0 : i32
    return %arg0, %0 : i32, i32
  }
}

</mosaic_0001>

<bundles_post_ra>
// kernel: forward.1
= control target key start
LH: loop header
LB: loop body
LE: loop exit
PB: predicated region body
PF: predicated region fallthrough
CT: control target
= control target key end

     0   :  { %s655_s12 = smov 0   ;;  %s657_s13 = smov 0   ;;  %s726_s0 = inlined_call_operand.vmem [shape: bf16[8,128], index: 0, kind: input, shape index: {}]   ;;  %s727_s1 = inlined_call_operand.vmem [shape: bf16[128,128], index: 1, kind: input, shape index: {}]   ;;  %s728_s2 = inlined_call_operand.vmem [shape: f32[1,128], index: 2, kind: input, shape index: {}]   ;;  %s729_s3 = inlined_call_operand.vmem [shape: f32[8,128], index: 3, kind: output, shape index: {}]  }
   0x1   :  { %s659_s14 = smov 0  }
   0x2 LB: > { %s28_s15 = sadd.s32 1, %s623_s13  ;;  %p512_p0 = scmp.ge.s32.totalorder %s627_s14, 1  ;;  %s627_s14 = sphi %s659_s14, %s13_s14   ;;  %s623_s13 = sphi %s657_s13, %s731_s13   ;;  %s619_s12 = sphi %s655_s12, %s730_s12  }
   0x3   : > { %p30_p1 = scmp.ge.s32.totalorder %s28_s15, 2  ;;  %p176_p2 = scmp.lt.s32.totalorder %s627_s14, 3 }
   0x5   : > { %s733_s15 = smov (%p30_p1, %s28_s15), 0  ;;  %p177_p3 = pnand %p512_p0, %p176_p2 }
   0x6   : > { %p230_p4 = scmp.eq.s32.totalorder (!%p177_p3), %s619_s12, 0 }
   0x7   : > { %180 = sbr.rel (%p177_p3) target bundleno = 834 (0x342), region = 32 }
   0xc   : > { %235 = sbr.rel (!%p230_p4) target bundleno = 17 (0x11), region = 36  ;;  %vm236_vm0 = vcmask (%p230_p4), 7168   ;;  %v629_v0 = vmov (%p230_p4), -inf   ;;  %v630_v1 = vmov (%p230_p4), 0.0  }
   0xd   : > { %237 = vst.msk [vmem:[#allocation2] sm:$0xff] (%p230_p4), %vm236_vm0, %v629_v0  ;;  %238 = vst.msk [vmem:[#allocation3] sm:$0xff] (%p230_p4), %vm236_vm0, %v630_v1 }
  0x11 PF: > { %v589_v2 = vld [vmem:[%s727_s1 + $0x38] sm:$0xff]   ;;  %v631_v3 = vmov 0.0   ;;  %v590_v4 = vld [vmem:[%s727_s1 + $0x30] sm:$0xff]   ;;  %vm632_vm1 = vmmov 0   ;;  %v591_v5 = vld [vmem:[%s727_s1 + $0x28] sm:$0xff]   ;;  %p523_p5 = scmp.ne.s32.totalorder %s619_s12, 0 }
  0x12   : > { %539 = vmatprep.subr.bf16.mxu0 %v631_v3  ;;  %555 = vmatprep.mubr.msk.bf16.mxu0 %vm632_vm1, %v631_v3  ;;  %v592_v6 = vld [vmem:[%s727_s1 + $0x20] sm:$0xff]   ;;  %v593_v7 = vld [vmem:[%s727_s1 + $0x18] sm:$0xff]   ;;  %v594_v8 = vld [vmem:[%s727_s1 + $0x10] sm:$0xff]  }
  0x13   : > { %540 = vmatpush3.bf16.msra.mxu0 %v589_v2  ;;  %v595_v9 = vld [vmem:[%s727_s1 + $0x8] sm:$0xff]   ;;  %v596_v10 = vld [vmem:[%s727_s1] sm:$0xff]  }
  0x14   : > { %541 = vmatprep.subr.bf16.mxu0 %v631_v3  ;;  %v239_v11 = vld [vmem:[%s726_s0] sm:$0xf] }
  0x15   : > { %v514_v12 = vld [vmem:[%s728_s2] ss:$0 sm:$0xff] }
  0x17   : > { %542 = vmatpush3.bf16.msra.mxu0 %v590_v4 }
  0x18   : > { %543 = vmatprep.subr.bf16.mxu0 %v631_v3 }
  0x1b   : > { %544 = vmatpush3.bf16.msra.mxu0 %v591_v5 }
  0x1c   : > { %545 = vmatprep.subr.bf16.mxu0 %v631_v3 }
  0x1f   : > { %546 = vmatpush3.bf16.msra.mxu0 %v592_v6 }
  0x20   : > { %547 = vmatprep.subr.bf16.mxu0 %v631_v3 }
  0x23   : > { %548 = vmatpush3.bf16.msra.mxu0 %v593_v7 }
  0x24   : > { %549 = vmatprep.subr.bf16.mxu0 %v631_v3 }
  0x27   : > { %550 = vmatpush3.bf16.msra.mxu0 %v594_v8 }
  0x28   : > { %551 = vmatprep.subr.bf16.mxu0 %v631_v3 }
  0x2b   : > { %552 = vmatpush3.bf16.msra.mxu0 %v595_v9 }
  0x2c   : > { %553 = vmatprep.subr.bf16.mxu0 %v631_v3 }
  0x2f   : > { %554 = vmatpush3.bf16.msra.mxu0 %v596_v10 }
  0x32   : > { %556 = vmatmul.mubr.bf16.vlgmr.msra.gmra.mxu0 %v239_v11 }
  0xf2   : > { %v345_v13 = vpop.f32.mrf.mxu0 }
  0xf3   : > { %v346_v14 = vadd.f32 %v514_v12, %v345_v13 }
  0xf4   : > { %v557_v15 = vpop.f32.mrf.mxu0  ;;  %353 = sbr.rel (%p523_p5) target bundleno = 672 (0x2a0), region = 40 }
  0xf6   : > { %v348_v16 = vpop.f32.mrf.mxu0 }
  0xf8   : > { %v558_v17 = vpop.f32.mrf.mxu0 }
  0xf9   : > { %355 = vmax.xlane.f32.xlu0 %v346_v14  ;;  %v633_v18 = vmov 0   ;;  %v354_v19 = vld [vmem:[#allocation2] sm:$0xff]  ;;  %vm374_vm2 = vcmask 7168   ;;  %v361_v29 = vld [vmem:[#allocation3] sm:$0xff] }
  0xfa   : > { %597 = vset.pattern.permute.xlu0 %v633_v18 }
 0x182   : > { %v356_v20 = vpop.xlane.xlu0 %355 }
 0x183   : > { %v357_v21 = vmax.f32 %v354_v19, %v356_v20 }
 0x185   : > { %v358_v22 = vsub.f32 %v354_v19, %v357_v21  ;;  %376 = vst.msk [vmem:[#allocation2] sm:$0xff] %vm374_vm2, %v357_v21  ;;  %365 = vperm.xlu0 %597, %v357_v21  }
 0x187   : > { %v359_v27 = vmul.f32 1.442695, %v358_v22 }
 0x200   : > { %v366_v23 = vpop.permute.xlu0 %365 }
 0x201   : > { %v368_v24 = vsub.f32 %v346_v14, %v366_v23 }
 0x203   : > { %v369_v25 = vmul.f32 1.442695, %v368_v24 }
 0x205   : > { %598 = vpow2.f32 %v369_v25 }
 0x206   : > { %600 = vpow2.f32 %v359_v27 }
 0x212   : > { %v599_v26 = vpop.eup %598 }
 0x213   : > { %371 = vadd.xlane.f32.xlu1 %v599_v26  ;;  %v601_v28 = vpop.eup %600 }
 0x214   : > { %v362_v30 = vmul.f32 %v601_v28, %v361_v29 }
 0x29c   : > { %v372_v31 = vpop.xlane.xlu1 %371 }
 0x29d   : > { %v373_v32 = vadd.f32 %v372_v31, %v362_v30 }
 0x29f   : > { %375 = vst.msk [vmem:[#allocation3] sm:$0xff] %vm374_vm2, %v373_v32 }
 0x2a0 PF: > { %378 = sbr.rel (!%p230_p4) target bundleno = 698 (0x2ba), region = 44  ;;  %v379_v35 = vld [vmem:[#allocation2] sm:$0xff] (%p230_p4)  ;;  %vm384_vm3 = vcmask (%p230_p4), 7168  }
 0x2a6   : > { %v380_v33 = vld [vmem:[#allocation3] sm:$0xff] }
 0x2a7   : > { %602 = vlog2.f32 %v380_v33 }
 0x2b4   : > { %v603_v34 = vpop.eup %602 }
 0x2b5   : > { %v382_v36 = vmul.f32 0.6931472, %v603_v34 }
 0x2b7   : > { %v383_v37 = vadd.f32 %v382_v36, %v379_v35 }
 0x2b9   : > { %385 = vst.msk [vmem:[#allocation2] sm:$0xff] %vm384_vm3, %v383_v37 }
 0x2ba PF: > { %p524_p6 = scmp.ne.s32.totalorder %s619_s12, 1 }
 0x2bc   : > { %389 = sbr.rel (%p524_p6) target bundleno = 834 (0x342), region = 48 }
 0x2c1   : > { %v390_v38 = vld [vmem:[#allocation2] sm:$0xff]  ;;  %v634_v39 = vmov 0  }
 0x2c2   : > { %604 = vset.pattern.permute.xlu0 %v634_v39 }
 0x2c3   : > { %393 = vperm.xlu0 %604, %v390_v38  }
 0x33e   : > { %v394_v40 = vpop.permute.xlu0 %393 }
 0x33f   : > { %v396_v41 = vsub.f32 %v346_v14, %v394_v40 }
 0x341   : > { %397 = vst [vmem:[%s729_s3] sm:$0xff] %v396_v41 }
 0x342 PF: > { %s13_s14 = sadd.s32 1, %s627_s14   ;;  %s730_s12 = smov %s623_s13 }
 0x343   : > { %p10_p7 = scmp.ge.s32.totalorder %s13_s14, 4   ;;  %s731_s13 = smov %s733_s15 }
 0x345   :  { %12 = sbr.rel (!%p10_p7) target bundleno = 2 (0x2), region = 84 }

</bundles_post_ra>
